<compile_context>
chip_gen: v7x
topology: tpu7x:2x2x1
jax: 0.10.0
libtpu: 0.0.40
codegen_flags: <defaults>
</compile_context>

<pallas_src>
import jax
import jax.numpy as jnp
from jax.experimental import pallas as pl
from jax.experimental.pallas import tpu as pltpu

H = 5          # hidden width
LANES = 128    # vreg lane count
SUBLANES = 8   # vreg sublane count (f32)

# Offsets into the packed parameter vector (length 76):
#   w1 (5x1) | b1 (5) | w2 (5x5) | b2 (5) | w3 (5x5) | b3 (5) | w4 (1x5) | b4 (1)
W1_OFF, B1_OFF = 0, 5
W2_OFF, B2_OFF = 10, 35
W3_OFF, B3_OFF = 40, 65
W4_OFF, B4_OFF = 70, 75
N_PARAMS = 76


def elman555_kernel(p_ref, x_ref, o_ref):
    # p_ref: (76,) f32 in SMEM (scalar prefetch, read with cheap sld).
    # x_ref / o_ref: (blk_rows, 128) f32 tiles in VMEM -- batch on sublanes AND lanes.
    x = x_ref[...]

    # fc1 + relu: the single input feature broadcast against each of the 5 rows (pure VPU).
    h = [jnp.maximum(p_ref[W1_OFF + j] * x + p_ref[B1_OFF + j], 0.0) for j in range(H)]

    # fc2 / fc3 + relu: unrolled 5-term scalar-broadcast MACs, tree-reduced to depth 3
    # (bias folded into the last leaf).
    def dense_relu(hin, w_off, b_off):
        hout = []
        for j in range(H):
            w = w_off + j * H
            t01 = hin[0] * p_ref[w + 0] + hin[1] * p_ref[w + 1]
            t23 = hin[2] * p_ref[w + 2] + hin[3] * p_ref[w + 3]
            t4b = hin[4] * p_ref[w + 4] + p_ref[b_off + j]
            hout.append(jnp.maximum((t01 + t23) + t4b, 0.0))
        return hout

    h = dense_relu(h, W2_OFF, B2_OFF)
    h = dense_relu(h, W3_OFF, B3_OFF)

    # fc4 (no activation): tree-reduced 5-term reduction down to one lane-dense tile.
    t01 = h[0] * p_ref[W4_OFF + 0] + h[1] * p_ref[W4_OFF + 1]
    t23 = h[2] * p_ref[W4_OFF + 2] + h[3] * p_ref[W4_OFF + 3]
    t4b = h[4] * p_ref[W4_OFF + 4] + p_ref[B4_OFF]
    o_ref[...] = (t01 + t23) + t4b


def pack_params(params):
    """Flatten PyTorch-layout weights ((out,in)) and biases into one f32 vector for SMEM."""
    flat = jnp.concatenate([
        params["w1"].reshape(-1), params["b1"].reshape(-1),
        params["w2"].reshape(-1), params["b2"].reshape(-1),
        params["w3"].reshape(-1), params["b3"].reshape(-1),
        params["w4"].reshape(-1), params["b4"].reshape(-1),
    ]).astype(jnp.float32)
    assert flat.shape == (N_PARAMS,)
    return flat


def reference_forward(x, p):
    """Pure-JAX reference with PyTorch semantics: y = x @ W.T + b."""
    h = jnp.maximum(x @ p["w1"].T + p["b1"], 0.0)
    h = jnp.maximum(h @ p["w2"].T + p["b2"], 0.0)
    h = jnp.maximum(h @ p["w3"].T + p["b3"], 0.0)
    return h @ p["w4"].T + p["b4"]


def elman555_forward(x, params, *, max_block_rows=512, force_pallas=False):
    """x: (N, 1) float32.  Returns (N, 1) float32 (same semantics as the PyTorch module)."""
    n = x.shape[0]

    # At tiny N the kernel is pure launch latency; plain jitted XLA is just as fast.
    if n < 1024 and not force_pallas:
        return reference_forward(x.astype(jnp.float32), params)

    # Row/block geometry: batch packed into (rows, 128); blocks of (blk_rows, 128) with
    # blk_rows a multiple of 8 (the (8,128) constraint), capped at max_block_rows
    # (512 rows -> 256 KiB per buffer, fits every generation incl. v7x's 64 MiB VMEM).
    rows = -(-n // LANES)
    blk_rows = min(max_block_rows, -(-rows // SUBLANES) * SUBLANES)
    rows_pad = -(-rows // blk_rows) * blk_rows
    n_pad = rows_pad * LANES

    # Pad only the contiguous tail (no full zeros-and-scatter copy), then a pure reshape.
    x_flat = x.reshape(-1).astype(jnp.float32)
    x_blocks = jnp.pad(x_flat, (0, n_pad - n)).reshape(rows_pad, LANES)
    p_flat = pack_params(params)

    grid = (rows_pad // blk_rows,)
    out = pl.pallas_call(
        elman555_kernel,
        out_shape=jax.ShapeDtypeStruct((rows_pad, LANES), jnp.float32),
        grid_spec=pltpu.PrefetchScalarGridSpec(
            num_scalar_prefetch=1,                      # packed params -> SMEM, once
            grid=grid,
            in_specs=[pl.BlockSpec((blk_rows, LANES), lambda i, p: (i, 0))],
            out_specs=pl.BlockSpec((blk_rows, LANES), lambda i, p: (i, 0)),
        ),
        compiler_params=pltpu.CompilerParams(
            dimension_semantics=("parallel",),          # shards batch across v7x's 2 TCs
        ),
        cost_estimate=pl.CostEstimate(
            flops=145 * n_pad, transcendentals=0, bytes_accessed=8 * n_pad),
    )(p_flat, x_blocks)

    # Padded tail lanes hold relu(bias)-derived garbage; slice them off.
    return out.reshape(-1)[:n].reshape(n, 1)


def init_params(key):
    """Deterministic init mimicking nn.Linear's U(-1/sqrt(fan_in), 1/sqrt(fan_in)).
    Weights stored in PyTorch layout: (out_features, in_features)."""
    dims = [(1, 5), (5, 5), (5, 5), (5, 1)]          # (fan_in, fan_out)
    params = {}
    keys = jax.random.split(key, 2 * len(dims))
    for i, (fan_in, fan_out) in enumerate(dims):
        bound = 1.0 / (fan_in ** 0.5)
        w = jax.random.uniform(keys[2 * i], (fan_out, fan_in),
                               minval=-bound, maxval=bound, dtype=jnp.float32)
        b = jax.random.uniform(keys[2 * i + 1], (fan_out,),
                               minval=-bound, maxval=bound, dtype=jnp.float32)
        params[f"w{i + 1}"] = w
        params[f"b{i + 1}"] = b
    return params


if __name__ == "__main__":
    key = jax.random.PRNGKey(0)
    params = init_params(key)

    # Matches the module's intended input: x = np.linspace(0, 1, 50) of shape (50, 1).
    x = jnp.linspace(0.0, 1.0, 50, dtype=jnp.float32).reshape(50, 1)
    out = jax.block_until_ready(elman555_forward(x, params, force_pallas=True))
    ref = reference_forward(x, params)
    assert out.shape == (50, 1)
    assert jnp.allclose(out, ref, atol=1e-5, rtol=1e-5), (
        f"max abs err {jnp.max(jnp.abs(out - ref))}")

    # Exercise the multi-block grid path (2 blocks of (8, 128)) with a ragged batch.
    x2 = jax.random.uniform(jax.random.PRNGKey(1), (2000, 1), dtype=jnp.float32)
    out2 = jax.block_until_ready(
        elman555_forward(x2, params, max_block_rows=8, force_pallas=True))
    ref2 = reference_forward(x2, params)
    assert out2.shape == (2000, 1)
    assert jnp.allclose(out2, ref2, atol=1e-5, rtol=1e-5), (
        f"max abs err {jnp.max(jnp.abs(out2 - ref2))}")

    print("KERNEL_OK")
</pallas_src>

<mosaic_0001>
module attributes {stable_mosaic.version = 11 : i64} {
  func.func @elman555_kernel(%arg0: i32, %arg1: memref<76xf32, #tpu.memory_space<smem>>, %arg2: memref<8x128xf32, #tpu.memory_space<vmem>>, %arg3: memref<8x128xf32, #tpu.memory_space<vmem>>) attributes {dimension_semantics = [#tpu.dimension_semantics<parallel>], iteration_bounds = array<i64: 1>, scalar_prefetch = 1 : i64, scratch_operands = 0 : i64, tpu.core_type = #tpu.core_type<tc>, window_params = [{transform_indices = @transform_0, window_bounds = array<i64: 8, 128>}, {transform_indices = @transform_1, window_bounds = array<i64: 8, 128>}]} {
    %c0 = arith.constant 0 : index
    %c0_0 = arith.constant 0 : index
    %0 = vector.load %arg2[%c0, %c0_0] : memref<8x128xf32, #tpu.memory_space<vmem>>, vector<8x128xf32>
    %c0_1 = arith.constant 0 : index
    %1 = memref.load %arg1[%c0_1] : memref<76xf32, #tpu.memory_space<smem>>
    %2 = vector.broadcast %1 : f32 to vector<8x128xf32>
    %3 = arith.mulf %2, %0 : vector<8x128xf32>
    %c5 = arith.constant 5 : index
    %4 = memref.load %arg1[%c5] : memref<76xf32, #tpu.memory_space<smem>>
    %5 = vector.broadcast %4 : f32 to vector<8x128xf32>
    %6 = arith.addf %3, %5 : vector<8x128xf32>
    %cst = arith.constant 0.000000e+00 : f32
    %7 = vector.broadcast %cst : f32 to vector<8x128xf32>
    %8 = arith.maximumf %6, %7 : vector<8x128xf32>
    %c1 = arith.constant 1 : index
    %9 = memref.load %arg1[%c1] : memref<76xf32, #tpu.memory_space<smem>>
    %10 = vector.broadcast %9 : f32 to vector<8x128xf32>
    %11 = arith.mulf %10, %0 : vector<8x128xf32>
    %c6 = arith.constant 6 : index
    %12 = memref.load %arg1[%c6] : memref<76xf32, #tpu.memory_space<smem>>
    %13 = vector.broadcast %12 : f32 to vector<8x128xf32>
    %14 = arith.addf %11, %13 : vector<8x128xf32>
    %cst_2 = arith.constant 0.000000e+00 : f32
    %15 = vector.broadcast %cst_2 : f32 to vector<8x128xf32>
    %16 = arith.maximumf %14, %15 : vector<8x128xf32>
    %c2 = arith.constant 2 : index
    %17 = memref.load %arg1[%c2] : memref<76xf32, #tpu.memory_space<smem>>
    %18 = vector.broadcast %17 : f32 to vector<8x128xf32>
    %19 = arith.mulf %18, %0 : vector<8x128xf32>
    %c7 = arith.constant 7 : index
    %20 = memref.load %arg1[%c7] : memref<76xf32, #tpu.memory_space<smem>>
    %21 = vector.broadcast %20 : f32 to vector<8x128xf32>
    %22 = arith.addf %19, %21 : vector<8x128xf32>
    %cst_3 = arith.constant 0.000000e+00 : f32
    %23 = vector.broadcast %cst_3 : f32 to vector<8x128xf32>
    %24 = arith.maximumf %22, %23 : vector<8x128xf32>
    %c3 = arith.constant 3 : index
    %25 = memref.load %arg1[%c3] : memref<76xf32, #tpu.memory_space<smem>>
    %26 = vector.broadcast %25 : f32 to vector<8x128xf32>
    %27 = arith.mulf %26, %0 : vector<8x128xf32>
    %c8 = arith.constant 8 : index
    %28 = memref.load %arg1[%c8] : memref<76xf32, #tpu.memory_space<smem>>
    %29 = vector.broadcast %28 : f32 to vector<8x128xf32>
    %30 = arith.addf %27, %29 : vector<8x128xf32>
    %cst_4 = arith.constant 0.000000e+00 : f32
    %31 = vector.broadcast %cst_4 : f32 to vector<8x128xf32>
    %32 = arith.maximumf %30, %31 : vector<8x128xf32>
    %c4 = arith.constant 4 : index
    %33 = memref.load %arg1[%c4] : memref<76xf32, #tpu.memory_space<smem>>
    %34 = vector.broadcast %33 : f32 to vector<8x128xf32>
    %35 = arith.mulf %34, %0 : vector<8x128xf32>
    %c9 = arith.constant 9 : index
    %36 = memref.load %arg1[%c9] : memref<76xf32, #tpu.memory_space<smem>>
    %37 = vector.broadcast %36 : f32 to vector<8x128xf32>
    %38 = arith.addf %35, %37 : vector<8x128xf32>
    %cst_5 = arith.constant 0.000000e+00 : f32
    %39 = vector.broadcast %cst_5 : f32 to vector<8x128xf32>
    %40 = arith.maximumf %38, %39 : vector<8x128xf32>
    %c10 = arith.constant 10 : index
    %41 = memref.load %arg1[%c10] : memref<76xf32, #tpu.memory_space<smem>>
    %42 = vector.broadcast %41 : f32 to vector<8x128xf32>
    %43 = arith.mulf %8, %42 : vector<8x128xf32>
    %c11 = arith.constant 11 : index
    %44 = memref.load %arg1[%c11] : memref<76xf32, #tpu.memory_space<smem>>
    %45 = vector.broadcast %44 : f32 to vector<8x128xf32>
    %46 = arith.mulf %16, %45 : vector<8x128xf32>
    %47 = arith.addf %43, %46 : vector<8x128xf32>
    %c12 = arith.constant 12 : index
    %48 = memref.load %arg1[%c12] : memref<76xf32, #tpu.memory_space<smem>>
    %49 = vector.broadcast %48 : f32 to vector<8x128xf32>
    %50 = arith.mulf %24, %49 : vector<8x128xf32>
    %c13 = arith.constant 13 : index
    %51 = memref.load %arg1[%c13] : memref<76xf32, #tpu.memory_space<smem>>
    %52 = vector.broadcast %51 : f32 to vector<8x128xf32>
    %53 = arith.mulf %32, %52 : vector<8x128xf32>
    %54 = arith.addf %50, %53 : vector<8x128xf32>
    %c14 = arith.constant 14 : index
    %55 = memref.load %arg1[%c14] : memref<76xf32, #tpu.memory_space<smem>>
    %56 = vector.broadcast %55 : f32 to vector<8x128xf32>
    %57 = arith.mulf %40, %56 : vector<8x128xf32>
    %c35 = arith.constant 35 : index
    %58 = memref.load %arg1[%c35] : memref<76xf32, #tpu.memory_space<smem>>
    %59 = vector.broadcast %58 : f32 to vector<8x128xf32>
    %60 = arith.addf %57, %59 : vector<8x128xf32>
    %61 = arith.addf %47, %54 : vector<8x128xf32>
    %62 = arith.addf %61, %60 : vector<8x128xf32>
    %cst_6 = arith.constant 0.000000e+00 : f32
    %63 = vector.broadcast %cst_6 : f32 to vector<8x128xf32>
    %64 = arith.maximumf %62, %63 : vector<8x128xf32>
    %c15 = arith.constant 15 : index
    %65 = memref.load %arg1[%c15] : memref<76xf32, #tpu.memory_space<smem>>
    %66 = vector.broadcast %65 : f32 to vector<8x128xf32>
    %67 = arith.mulf %8, %66 : vector<8x128xf32>
    %c16 = arith.constant 16 : index
    %68 = memref.load %arg1[%c16] : memref<76xf32, #tpu.memory_space<smem>>
    %69 = vector.broadcast %68 : f32 to vector<8x128xf32>
    %70 = arith.mulf %16, %69 : vector<8x128xf32>
    %71 = arith.addf %67, %70 : vector<8x128xf32>
    %c17 = arith.constant 17 : index
    %72 = memref.load %arg1[%c17] : memref<76xf32, #tpu.memory_space<smem>>
    %73 = vector.broadcast %72 : f32 to vector<8x128xf32>
    %74 = arith.mulf %24, %73 : vector<8x128xf32>
    %c18 = arith.constant 18 : index
    %75 = memref.load %arg1[%c18] : memref<76xf32, #tpu.memory_space<smem>>
    %76 = vector.broadcast %75 : f32 to vector<8x128xf32>
    %77 = arith.mulf %32, %76 : vector<8x128xf32>
    %78 = arith.addf %74, %77 : vector<8x128xf32>
    %c19 = arith.constant 19 : index
    %79 = memref.load %arg1[%c19] : memref<76xf32, #tpu.memory_space<smem>>
    %80 = vector.broadcast %79 : f32 to vector<8x128xf32>
    %81 = arith.mulf %40, %80 : vector<8x128xf32>
    %c36 = arith.constant 36 : index
    %82 = memref.load %arg1[%c36] : memref<76xf32, #tpu.memory_space<smem>>
    %83 = vector.broadcast %82 : f32 to vector<8x128xf32>
    %84 = arith.addf %81, %83 : vector<8x128xf32>
    %85 = arith.addf %71, %78 : vector<8x128xf32>
    %86 = arith.addf %85, %84 : vector<8x128xf32>
    %cst_7 = arith.constant 0.000000e+00 : f32
    %87 = vector.broadcast %cst_7 : f32 to vector<8x128xf32>
    %88 = arith.maximumf %86, %87 : vector<8x128xf32>
    %c20 = arith.constant 20 : index
    %89 = memref.load %arg1[%c20] : memref<76xf32, #tpu.memory_space<smem>>
    %90 = vector.broadcast %89 : f32 to vector<8x128xf32>
    %91 = arith.mulf %8, %90 : vector<8x128xf32>
    %c21 = arith.constant 21 : index
    %92 = memref.load %arg1[%c21] : memref<76xf32, #tpu.memory_space<smem>>
    %93 = vector.broadcast %92 : f32 to vector<8x128xf32>
    %94 = arith.mulf %16, %93 : vector<8x128xf32>
    %95 = arith.addf %91, %94 : vector<8x128xf32>
    %c22 = arith.constant 22 : index
    %96 = memref.load %arg1[%c22] : memref<76xf32, #tpu.memory_space<smem>>
    %97 = vector.broadcast %96 : f32 to vector<8x128xf32>
    %98 = arith.mulf %24, %97 : vector<8x128xf32>
    %c23 = arith.constant 23 : index
    %99 = memref.load %arg1[%c23] : memref<76xf32, #tpu.memory_space<smem>>
    %100 = vector.broadcast %99 : f32 to vector<8x128xf32>
    %101 = arith.mulf %32, %100 : vector<8x128xf32>
    %102 = arith.addf %98, %101 : vector<8x128xf32>
    %c24 = arith.constant 24 : index
    %103 = memref.load %arg1[%c24] : memref<76xf32, #tpu.memory_space<smem>>
    %104 = vector.broadcast %103 : f32 to vector<8x128xf32>
    %105 = arith.mulf %40, %104 : vector<8x128xf32>
    %c37 = arith.constant 37 : index
    %106 = memref.load %arg1[%c37] : memref<76xf32, #tpu.memory_space<smem>>
    %107 = vector.broadcast %106 : f32 to vector<8x128xf32>
    %108 = arith.addf %105, %107 : vector<8x128xf32>
    %109 = arith.addf %95, %102 : vector<8x128xf32>
    %110 = arith.addf %109, %108 : vector<8x128xf32>
    %cst_8 = arith.constant 0.000000e+00 : f32
    %111 = vector.broadcast %cst_8 : f32 to vector<8x128xf32>
    %112 = arith.maximumf %110, %111 : vector<8x128xf32>
    %c25 = arith.constant 25 : index
    %113 = memref.load %arg1[%c25] : memref<76xf32, #tpu.memory_space<smem>>
    %114 = vector.broadcast %113 : f32 to vector<8x128xf32>
    %115 = arith.mulf %8, %114 : vector<8x128xf32>
    %c26 = arith.constant 26 : index
    %116 = memref.load %arg1[%c26] : memref<76xf32, #tpu.memory_space<smem>>
    %117 = vector.broadcast %116 : f32 to vector<8x128xf32>
    %118 = arith.mulf %16, %117 : vector<8x128xf32>
    %119 = arith.addf %115, %118 : vector<8x128xf32>
    %c27 = arith.constant 27 : index
    %120 = memref.load %arg1[%c27] : memref<76xf32, #tpu.memory_space<smem>>
    %121 = vector.broadcast %120 : f32 to vector<8x128xf32>
    %122 = arith.mulf %24, %121 : vector<8x128xf32>
    %c28 = arith.constant 28 : index
    %123 = memref.load %arg1[%c28] : memref<76xf32, #tpu.memory_space<smem>>
    %124 = vector.broadcast %123 : f32 to vector<8x128xf32>
    %125 = arith.mulf %32, %124 : vector<8x128xf32>
    %126 = arith.addf %122, %125 : vector<8x128xf32>
    %c29 = arith.constant 29 : index
    %127 = memref.load %arg1[%c29] : memref<76xf32, #tpu.memory_space<smem>>
    %128 = vector.broadcast %127 : f32 to vector<8x128xf32>
    %129 = arith.mulf %40, %128 : vector<8x128xf32>
    %c38 = arith.constant 38 : index
    %130 = memref.load %arg1[%c38] : memref<76xf32, #tpu.memory_space<smem>>
    %131 = vector.broadcast %130 : f32 to vector<8x128xf32>
    %132 = arith.addf %129, %131 : vector<8x128xf32>
    %133 = arith.addf %119, %126 : vector<8x128xf32>
    %134 = arith.addf %133, %132 : vector<8x128xf32>
    %cst_9 = arith.constant 0.000000e+00 : f32
    %135 = vector.broadcast %cst_9 : f32 to vector<8x128xf32>
    %136 = arith.maximumf %134, %135 : vector<8x128xf32>
    %c30 = arith.constant 30 : index
    %137 = memref.load %arg1[%c30] : memref<76xf32, #tpu.memory_space<smem>>
    %138 = vector.broadcast %137 : f32 to vector<8x128xf32>
    %139 = arith.mulf %8, %138 : vector<8x128xf32>
    %c31 = arith.constant 31 : index
    %140 = memref.load %arg1[%c31] : memref<76xf32, #tpu.memory_space<smem>>
    %141 = vector.broadcast %140 : f32 to vector<8x128xf32>
    %142 = arith.mulf %16, %141 : vector<8x128xf32>
    %143 = arith.addf %139, %142 : vector<8x128xf32>
    %c32 = arith.constant 32 : index
    %144 = memref.load %arg1[%c32] : memref<76xf32, #tpu.memory_space<smem>>
    %145 = vector.broadcast %144 : f32 to vector<8x128xf32>
    %146 = arith.mulf %24, %145 : vector<8x128xf32>
    %c33 = arith.constant 33 : index
    %147 = memref.load %arg1[%c33] : memref<76xf32, #tpu.memory_space<smem>>
    %148 = vector.broadcast %147 : f32 to vector<8x128xf32>
    %149 = arith.mulf %32, %148 : vector<8x128xf32>
    %150 = arith.addf %146, %149 : vector<8x128xf32>
    %c34 = arith.constant 34 : index
    %151 = memref.load %arg1[%c34] : memref<76xf32, #tpu.memory_space<smem>>
    %152 = vector.broadcast %151 : f32 to vector<8x128xf32>
    %153 = arith.mulf %40, %152 : vector<8x128xf32>
    %c39 = arith.constant 39 : index
    %154 = memref.load %arg1[%c39] : memref<76xf32, #tpu.memory_space<smem>>
    %155 = vector.broadcast %154 : f32 to vector<8x128xf32>
    %156 = arith.addf %153, %155 : vector<8x128xf32>
    %157 = arith.addf %143, %150 : vector<8x128xf32>
    %158 = arith.addf %157, %156 : vector<8x128xf32>
    %cst_10 = arith.constant 0.000000e+00 : f32
    %159 = vector.broadcast %cst_10 : f32 to vector<8x128xf32>
    %160 = arith.maximumf %158, %159 : vector<8x128xf32>
    %c40 = arith.constant 40 : index
    %161 = memref.load %arg1[%c40] : memref<76xf32, #tpu.memory_space<smem>>
    %162 = vector.broadcast %161 : f32 to vector<8x128xf32>
    %163 = arith.mulf %64, %162 : vector<8x128xf32>
    %c41 = arith.constant 41 : index
    %164 = memref.load %arg1[%c41] : memref<76xf32, #tpu.memory_space<smem>>
    %165 = vector.broadcast %164 : f32 to vector<8x128xf32>
    %166 = arith.mulf %88, %165 : vector<8x128xf32>
    %167 = arith.addf %163, %166 : vector<8x128xf32>
    %c42 = arith.constant 42 : index
    %168 = memref.load %arg1[%c42] : memref<76xf32, #tpu.memory_space<smem>>
    %169 = vector.broadcast %168 : f32 to vector<8x128xf32>
    %170 = arith.mulf %112, %169 : vector<8x128xf32>
    %c43 = arith.constant 43 : index
    %171 = memref.load %arg1[%c43] : memref<76xf32, #tpu.memory_space<smem>>
    %172 = vector.broadcast %171 : f32 to vector<8x128xf32>
    %173 = arith.mulf %136, %172 : vector<8x128xf32>
    %174 = arith.addf %170, %173 : vector<8x128xf32>
    %c44 = arith.constant 44 : index
    %175 = memref.load %arg1[%c44] : memref<76xf32, #tpu.memory_space<smem>>
    %176 = vector.broadcast %175 : f32 to vector<8x128xf32>
    %177 = arith.mulf %160, %176 : vector<8x128xf32>
    %c65 = arith.constant 65 : index
    %178 = memref.load %arg1[%c65] : memref<76xf32, #tpu.memory_space<smem>>
    %179 = vector.broadcast %178 : f32 to vector<8x128xf32>
    %180 = arith.addf %177, %179 : vector<8x128xf32>
    %181 = arith.addf %167, %174 : vector<8x128xf32>
    %182 = arith.addf %181, %180 : vector<8x128xf32>
    %cst_11 = arith.constant 0.000000e+00 : f32
    %183 = vector.broadcast %cst_11 : f32 to vector<8x128xf32>
    %184 = arith.maximumf %182, %183 : vector<8x128xf32>
    %c45 = arith.constant 45 : index
    %185 = memref.load %arg1[%c45] : memref<76xf32, #tpu.memory_space<smem>>
    %186 = vector.broadcast %185 : f32 to vector<8x128xf32>
    %187 = arith.mulf %64, %186 : vector<8x128xf32>
    %c46 = arith.constant 46 : index
    %188 = memref.load %arg1[%c46] : memref<76xf32, #tpu.memory_space<smem>>
    %189 = vector.broadcast %188 : f32 to vector<8x128xf32>
    %190 = arith.mulf %88, %189 : vector<8x128xf32>
    %191 = arith.addf %187, %190 : vector<8x128xf32>
    %c47 = arith.constant 47 : index
    %192 = memref.load %arg1[%c47] : memref<76xf32, #tpu.memory_space<smem>>
    %193 = vector.broadcast %192 : f32 to vector<8x128xf32>
    %194 = arith.mulf %112, %193 : vector<8x128xf32>
    %c48 = arith.constant 48 : index
    %195 = memref.load %arg1[%c48] : memref<76xf32, #tpu.memory_space<smem>>
    %196 = vector.broadcast %195 : f32 to vector<8x128xf32>
    %197 = arith.mulf %136, %196 : vector<8x128xf32>
    %198 = arith.addf %194, %197 : vector<8x128xf32>
    %c49 = arith.constant 49 : index
    %199 = memref.load %arg1[%c49] : memref<76xf32, #tpu.memory_space<smem>>
    %200 = vector.broadcast %199 : f32 to vector<8x128xf32>
    %201 = arith.mulf %160, %200 : vector<8x128xf32>
    %c66 = arith.constant 66 : index
    %202 = memref.load %arg1[%c66] : memref<76xf32, #tpu.memory_space<smem>>
    %203 = vector.broadcast %202 : f32 to vector<8x128xf32>
    %204 = arith.addf %201, %203 : vector<8x128xf32>
    %205 = arith.addf %191, %198 : vector<8x128xf32>
    %206 = arith.addf %205, %204 : vector<8x128xf32>
    %cst_12 = arith.constant 0.000000e+00 : f32
    %207 = vector.broadcast %cst_12 : f32 to vector<8x128xf32>
    %208 = arith.maximumf %206, %207 : vector<8x128xf32>
    %c50 = arith.constant 50 : index
    %209 = memref.load %arg1[%c50] : memref<76xf32, #tpu.memory_space<smem>>
    %210 = vector.broadcast %209 : f32 to vector<8x128xf32>
    %211 = arith.mulf %64, %210 : vector<8x128xf32>
    %c51 = arith.constant 51 : index
    %212 = memref.load %arg1[%c51] : memref<76xf32, #tpu.memory_space<smem>>
    %213 = vector.broadcast %212 : f32 to vector<8x128xf32>
    %214 = arith.mulf %88, %213 : vector<8x128xf32>
    %215 = arith.addf %211, %214 : vector<8x128xf32>
    %c52 = arith.constant 52 : index
    %216 = memref.load %arg1[%c52] : memref<76xf32, #tpu.memory_space<smem>>
    %217 = vector.broadcast %216 : f32 to vector<8x128xf32>
    %218 = arith.mulf %112, %217 : vector<8x128xf32>
    %c53 = arith.constant 53 : index
    %219 = memref.load %arg1[%c53] : memref<76xf32, #tpu.memory_space<smem>>
    %220 = vector.broadcast %219 : f32 to vector<8x128xf32>
    %221 = arith.mulf %136, %220 : vector<8x128xf32>
    %222 = arith.addf %218, %221 : vector<8x128xf32>
    %c54 = arith.constant 54 : index
    %223 = memref.load %arg1[%c54] : memref<76xf32, #tpu.memory_space<smem>>
    %224 = vector.broadcast %223 : f32 to vector<8x128xf32>
    %225 = arith.mulf %160, %224 : vector<8x128xf32>
    %c67 = arith.constant 67 : index
    %226 = memref.load %arg1[%c67] : memref<76xf32, #tpu.memory_space<smem>>
    %227 = vector.broadcast %226 : f32 to vector<8x128xf32>
    %228 = arith.addf %225, %227 : vector<8x128xf32>
    %229 = arith.addf %215, %222 : vector<8x128xf32>
    %230 = arith.addf %229, %228 : vector<8x128xf32>
    %cst_13 = arith.constant 0.000000e+00 : f32
    %231 = vector.broadcast %cst_13 : f32 to vector<8x128xf32>
    %232 = arith.maximumf %230, %231 : vector<8x128xf32>
    %c55 = arith.constant 55 : index
    %233 = memref.load %arg1[%c55] : memref<76xf32, #tpu.memory_space<smem>>
    %234 = vector.broadcast %233 : f32 to vector<8x128xf32>
    %235 = arith.mulf %64, %234 : vector<8x128xf32>
    %c56 = arith.constant 56 : index
    %236 = memref.load %arg1[%c56] : memref<76xf32, #tpu.memory_space<smem>>
    %237 = vector.broadcast %236 : f32 to vector<8x128xf32>
    %238 = arith.mulf %88, %237 : vector<8x128xf32>
    %239 = arith.addf %235, %238 : vector<8x128xf32>
    %c57 = arith.constant 57 : index
    %240 = memref.load %arg1[%c57] : memref<76xf32, #tpu.memory_space<smem>>
    %241 = vector.broadcast %240 : f32 to vector<8x128xf32>
    %242 = arith.mulf %112, %241 : vector<8x128xf32>
    %c58 = arith.constant 58 : index
    %243 = memref.load %arg1[%c58] : memref<76xf32, #tpu.memory_space<smem>>
    %244 = vector.broadcast %243 : f32 to vector<8x128xf32>
    %245 = arith.mulf %136, %244 : vector<8x128xf32>
    %246 = arith.addf %242, %245 : vector<8x128xf32>
    %c59 = arith.constant 59 : index
    %247 = memref.load %arg1[%c59] : memref<76xf32, #tpu.memory_space<smem>>
    %248 = vector.broadcast %247 : f32 to vector<8x128xf32>
    %249 = arith.mulf %160, %248 : vector<8x128xf32>
    %c68 = arith.constant 68 : index
    %250 = memref.load %arg1[%c68] : memref<76xf32, #tpu.memory_space<smem>>
    %251 = vector.broadcast %250 : f32 to vector<8x128xf32>
    %252 = arith.addf %249, %251 : vector<8x128xf32>
    %253 = arith.addf %239, %246 : vector<8x128xf32>
    %254 = arith.addf %253, %252 : vector<8x128xf32>
    %cst_14 = arith.constant 0.000000e+00 : f32
    %255 = vector.broadcast %cst_14 : f32 to vector<8x128xf32>
    %256 = arith.maximumf %254, %255 : vector<8x128xf32>
    %c60 = arith.constant 60 : index
    %257 = memref.load %arg1[%c60] : memref<76xf32, #tpu.memory_space<smem>>
    %258 = vector.broadcast %257 : f32 to vector<8x128xf32>
    %259 = arith.mulf %64, %258 : vector<8x128xf32>
    %c61 = arith.constant 61 : index
    %260 = memref.load %arg1[%c61] : memref<76xf32, #tpu.memory_space<smem>>
    %261 = vector.broadcast %260 : f32 to vector<8x128xf32>
    %262 = arith.mulf %88, %261 : vector<8x128xf32>
    %263 = arith.addf %259, %262 : vector<8x128xf32>
    %c62 = arith.constant 62 : index
    %264 = memref.load %arg1[%c62] : memref<76xf32, #tpu.memory_space<smem>>
    %265 = vector.broadcast %264 : f32 to vector<8x128xf32>
    %266 = arith.mulf %112, %265 : vector<8x128xf32>
    %c63 = arith.constant 63 : index
    %267 = memref.load %arg1[%c63] : memref<76xf32, #tpu.memory_space<smem>>
    %268 = vector.broadcast %267 : f32 to vector<8x128xf32>
    %269 = arith.mulf %136, %268 : vector<8x128xf32>
    %270 = arith.addf %266, %269 : vector<8x128xf32>
    %c64 = arith.constant 64 : index
    %271 = memref.load %arg1[%c64] : memref<76xf32, #tpu.memory_space<smem>>
    %272 = vector.broadcast %271 : f32 to vector<8x128xf32>
    %273 = arith.mulf %160, %272 : vector<8x128xf32>
    %c69 = arith.constant 69 : index
    %274 = memref.load %arg1[%c69] : memref<76xf32, #tpu.memory_space<smem>>
    %275 = vector.broadcast %274 : f32 to vector<8x128xf32>
    %276 = arith.addf %273, %275 : vector<8x128xf32>
    %277 = arith.addf %263, %270 : vector<8x128xf32>
    %278 = arith.addf %277, %276 : vector<8x128xf32>
    %cst_15 = arith.constant 0.000000e+00 : f32
    %279 = vector.broadcast %cst_15 : f32 to vector<8x128xf32>
    %280 = arith.maximumf %278, %279 : vector<8x128xf32>
    %c70 = arith.constant 70 : index
    %281 = memref.load %arg1[%c70] : memref<76xf32, #tpu.memory_space<smem>>
    %282 = vector.broadcast %281 : f32 to vector<8x128xf32>
    %283 = arith.mulf %184, %282 : vector<8x128xf32>
    %c71 = arith.constant 71 : index
    %284 = memref.load %arg1[%c71] : memref<76xf32, #tpu.memory_space<smem>>
    %285 = vector.broadcast %284 : f32 to vector<8x128xf32>
    %286 = arith.mulf %208, %285 : vector<8x128xf32>
    %287 = arith.addf %283, %286 : vector<8x128xf32>
    %c72 = arith.constant 72 : index
    %288 = memref.load %arg1[%c72] : memref<76xf32, #tpu.memory_space<smem>>
    %289 = vector.broadcast %288 : f32 to vector<8x128xf32>
    %290 = arith.mulf %232, %289 : vector<8x128xf32>
    %c73 = arith.constant 73 : index
    %291 = memref.load %arg1[%c73] : memref<76xf32, #tpu.memory_space<smem>>
    %292 = vector.broadcast %291 : f32 to vector<8x128xf32>
    %293 = arith.mulf %256, %292 : vector<8x128xf32>
    %294 = arith.addf %290, %293 : vector<8x128xf32>
    %c74 = arith.constant 74 : index
    %295 = memref.load %arg1[%c74] : memref<76xf32, #tpu.memory_space<smem>>
    %296 = vector.broadcast %295 : f32 to vector<8x128xf32>
    %297 = arith.mulf %280, %296 : vector<8x128xf32>
    %c75 = arith.constant 75 : index
    %298 = memref.load %arg1[%c75] : memref<76xf32, #tpu.memory_space<smem>>
    %299 = vector.broadcast %298 : f32 to vector<8x128xf32>
    %300 = arith.addf %297, %299 : vector<8x128xf32>
    %301 = arith.addf %287, %294 : vector<8x128xf32>
    %302 = arith.addf %301, %300 : vector<8x128xf32>
    %c0_16 = arith.constant 0 : index
    %c0_17 = arith.constant 0 : index
    %303 = vector.load %arg3[%c0_16, %c0_17] : memref<8x128xf32, #tpu.memory_space<vmem>>, vector<8x128xf32>
    tpu.vector_store %arg3[%c0_16, %c0_17], %302 {strides = array<i32>} : memref<8x128xf32, #tpu.memory_space<vmem>>, vector<8x128xf32>,
    return
  }
  func.func @transform_0(%arg0: i32, %arg1: memref<76xf32, #tpu.memory_space<smem>>) -> (i32, i32) {
    %c0_i32 = arith.constant 0 : i32
    %c0_i32_0 = arith.constant 0 : i32
    return %arg0, %c0_i32 : i32, i32
  }
  func.func @transform_1(%arg0: i32, %arg1: memref<76xf32, #tpu.memory_space<smem>>) -> (i32, i32) {
    %c0_i32 = arith.constant 0 : i32
    %c0_i32_0 = arith.constant 0 : i32
    return %arg0, %c0_i32 : i32, i32
  }
}

</mosaic_0001>

<bundles_post_ra>
// kernel: tpu_custom_call.1
= control target key start
LH: loop header
LB: loop body
LE: loop exit
PB: predicated region body
PF: predicated region fallthrough
CT: control target
= control target key end

     0   :  { %s796_s0 = inlined_call_operand.hbm [shape: f32[76], index: 0, kind: input, shape index: {}]   ;;  %s797_s1 = inlined_call_operand.hbm [shape: f32[8,128], index: 1, kind: input, shape index: {}]   ;;  %s798_s2 = inlined_call_operand.hbm [shape: f32[8,128], index: 2, kind: output, shape index: {}]  }
   0x1   :  { %s408_s11 = scalar_lea.hbm %s796_s0, 16 }
   0x2   :  { %p409_p0 = scmp.ne.s32.totalorder %s796_s0, %s408_s11  ;;  %p412_p1 = scmp.lt.u32.totalorder %s408_s11, %s796_s0 }
   0x4   :  { %p414_p2 = pnand %p412_p1, %p409_p0 }
   0x6   :  { %417 = shalt.err (!%p414_p2)  }
   0x7   :  { %s468_s16 = smov [#allocation3]  }
   0x8   :  { %8 = dma.hbm_to_smem %s796_s0, 16, %s468_s16, [#allocation2] }
   0x9   :  { %462 = dma.done.wait [#allocation2], 16 }
   0xa   :  { %463 = vsyncadd [#allocation2], 4294967280 }
   0xb   :  { %10 = sfence }
   0xc   :  { %11 = vsyncpa [#allocation5], 0 }
   0xd   :  { %12 = vsyncpa [#allocation6], 0  ;;  %s469_s19 = smov [#allocation4]   ;;  %s418_s23 = scalar_lea.hbm %s797_s1, 128 }
   0xe   :  { %s19_s20 = sshll.u32 %s469_s19, 4  ;;  %p419_p3 = scmp.ne.s32.totalorder %s797_s1, %s418_s23  ;;  %s20_s20 = int_to_ptr.vmem [resolvable:$true] %s19_s20 }
   0xf   :  { %p422_p4 = scmp.lt.u32.totalorder %s418_s23, %s797_s1 }
  0x11   :  { %p424_p5 = pnand %p422_p4, %p419_p3 }
  0x13   :  { %427 = shalt.err (!%p424_p5)
}
  0x14   :  { %s428_s0 = scalar_lea.vmem %s20_s20, 128  ;;  %p433_p7 = scmp.lt.s32.totalorder %s20_s20, %s20_s20 }
  0x15   :  { %p429_p6 = scmp.ne.s32.totalorder %s20_s20, %s428_s0  ;;  %p434_p8 = scmp.lt.s32.totalorder %s428_s0, %s428_s0 }
  0x17   :  { %p435_p9 = por %p434_p8, %p433_p7 }
  0x19   :  { %p436_p10 = pnand %p435_p9, %p429_p6 }
  0x1b   :  { %439 = shalt.err (!%p436_p10)
}
  0x1c   :  { %22 = dma.hbm_to_vmem [thread:$0]  %s797_s1, 128, %s20_s20, [#allocation5]  }
  0x1d   :  { %464 = dma.done.wait [#allocation5], 128  }
  0x1e   :  { %465 = vsyncadd [#allocation5], 4294967168  ;;  %s27_s30 = sld [smem:[#allocation3]]  ;;  %s330_s3 = sld [smem:[#allocation3 + $0x5]]  ;;  %v26_v0 = vld [vmem:[#allocation4] sm:$0xff] }
  0x1f   :  { %s331_s4 = sld [smem:[#allocation3 + $0x1]]  ;;  %s332_s5 = sld [smem:[#allocation3 + $0x6]] }
  0x20   :  { %s333_s6 = sld [smem:[#allocation3 + $0x2]]  ;;  %s510_s7 = sld [smem:[#allocation3 + $0x7]] }
  0x21   :  { %s335_s8 = sld [smem:[#allocation3 + $0x3]]  ;;  %s512_s9 = sld [smem:[#allocation3 + $0x8]] }
  0x22   :  { %s514_s10 = sld [smem:[#allocation3 + $0x4]]  ;;  %s516_s11 = sld [smem:[#allocation3 + $0x9]] }
  0x23   :  { %s518_s12 = sld [smem:[#allocation3 + $0xa]]  ;;  %s520_s1 = sld [smem:[#allocation3 + $0xb]] }
  0x24   :  { %v28_v1 = vstv %s27_s30  ;;  %v31_v2 = vstv %s330_s3  ;;  %s522_s13 = sld [smem:[#allocation3 + $0xc]]  ;;  %s524_s14 = sld [smem:[#allocation3 + $0xd]] }
  0x25   :  { %v29_v3 = vmul.f32 %v28_v1, %v26_v0  ;;  %v35_v4 = vstv %s331_s4  ;;  %v38_v5 = vstv %s332_s5  ;;  %s526_s15 = sld [smem:[#allocation3 + $0xe]]  ;;  %s528_s16 = sld [smem:[#allocation3 + $0x23]] }
  0x26   :  { %v36_v6 = vmul.f32 %v35_v4, %v26_v0  ;;  %v42_v7 = vstv %s333_s6  ;;  %v45_v8 = vstv %s510_s7  ;;  %s531_s17 = sld [smem:[#allocation3 + $0xf]]  ;;  %s533_s18 = sld [smem:[#allocation3 + $0x10]] }
  0x27   :  { %v32_v9 = vadd.f32 %v31_v2, %v29_v3  ;;  %v43_v10 = vmul.f32 %v42_v7, %v26_v0  ;;  %v49_v11 = vstv %s335_s8  ;;  %v52_v12 = vstv %s512_s9  ;;  %s536_s19 = sld [smem:[#allocation3 + $0x11]]  ;;  %s538_s20 = sld [smem:[#allocation3 + $0x12]] }
  0x28   :  { %v39_v13 = vadd.f32 %v38_v5, %v36_v6  ;;  %v50_v14 = vmul.f32 %v49_v11, %v26_v0  ;;  %v56_v15 = vstv %s514_s10  ;;  %v59_v16 = vstv %s516_s11  ;;  %s542_s21 = sld [smem:[#allocation3 + $0x13]]  ;;  %s547_s22 = sld [smem:[#allocation3 + $0x24]] }
  0x29   :  { %v544_v17 = vmax.f32 %v32_v9, 0.0  ;;  %v46_v18 = vadd.f32 %v45_v8, %v43_v10  ;;  %v57_v19 = vmul.f32 %v56_v15, %v26_v0  ;;  %v63_v20 = vstv %s518_s12  ;;  %s549_s23 = sld [smem:[#allocation3 + $0x14]]  ;;  %s555_s24 = sld [smem:[#allocation3 + $0x15]] }
  0x2a   :  { %v551_v21 = vmax.f32 %v39_v13, 0.0  ;;  %v53_v22 = vadd.f32 %v52_v12, %v50_v14  ;;  %v66_v23 = vstv %s520_s1  ;;  %v70_v24 = vstv %s522_s13  ;;  %s561_s25 = sld [smem:[#allocation3 + $0x16]]  ;;  %s563_s26 = sld [smem:[#allocation3 + $0x17]] }
  0x2b   :  { %v557_v25 = vmax.f32 %v46_v18, 0.0  ;;  %v60_v26 = vadd.f32 %v59_v16, %v57_v19  ;;  %v64_v27 = vmul.f32 %v63_v20, %v544_v17  ;;  %v73_v28 = vstv %s524_s14  ;;  %s570_s27 = sld [smem:[#allocation3 + $0x18]]  ;;  %s577_s0 = sld [smem:[#allocation3 + $0x25]] }
  0x2c   :  { %v565_v29 = vmax.f32 %v53_v22, 0.0  ;;  %v67_v30 = vmul.f32 %v66_v23, %v551_v21  ;;  %v77_v31 = vstv %s526_s15  ;;  %v80_v32 = vstv %s528_s16  ;;  %s579_s28 = sld [smem:[#allocation3 + $0x19]]  ;;  %s584_s29 = sld [smem:[#allocation3 + $0x1a]] }
  0x2d   :  { %v572_v33 = vmax.f32 %v60_v26, 0.0  ;;  %v71_v34 = vmul.f32 %v70_v24, %v557_v25  ;;  %v86_v35 = vstv %s531_s17  ;;  %v89_v36 = vstv %s533_s18  ;;  %s590_s30 = sld [smem:[#allocation3 + $0x1b]]  ;;  %s592_s3 = sld [smem:[#allocation3 + $0x1c]] }
  0x2e   :  { %v68_v37 = vadd.f32 %v67_v30, %v64_v27  ;;  %v74_v38 = vmul.f32 %v73_v28, %v565_v29  ;;  %v87_v39 = vmul.f32 %v86_v35, %v544_v17  ;;  %v90_v40 = vmul.f32 %v89_v36, %v551_v21  ;;  %s599_s4 = sld [smem:[#allocation3 + $0x1d]]  ;;  %s601_s5 = sld [smem:[#allocation3 + $0x26]] }
  0x2f   :  { %v78_v41 = vmul.f32 %v77_v31, %v572_v33  ;;  %v93_v42 = vstv %s536_s19  ;;  %v96_v43 = vstv %s538_s20  ;;  %v100_v44 = vstv %s542_s21  ;;  %s605_s6 = sld [smem:[#allocation3 + $0x1e]]  ;;  %s610_s7 = sld [smem:[#allocation3 + $0x1f]] }
  0x30   :  { %v75_v45 = vadd.f32 %v74_v38, %v71_v34  ;;  %v91_v46 = vadd.f32 %v90_v40, %v87_v39  ;;  %v94_v47 = vmul.f32 %v93_v42, %v557_v25  ;;  %v97_v48 = vmul.f32 %v96_v43, %v565_v29  ;;  %s612_s8 = sld [smem:[#allocation3 + $0x20]]  ;;  %s616_s9 = sld [smem:[#allocation3 + $0x21]] }
  0x31   :  { %v81_v49 = vadd.f32 %v80_v32, %v78_v41  ;;  %v101_v50 = vmul.f32 %v100_v44, %v572_v33  ;;  %v103_v51 = vstv %s547_s22  ;;  %v109_v52 = vstv %s549_s23  ;;  %s621_s10 = sld [smem:[#allocation3 + $0x22]]  ;;  %s623_s11 = sld [smem:[#allocation3 + $0x27]] }
  0x32   :  { %v82_v53 = vadd.f32 %v75_v45, %v68_v37  ;;  %v98_v54 = vadd.f32 %v97_v48, %v94_v47  ;;  %v110_v55 = vmul.f32 %v109_v52, %v544_v17  ;;  %v112_v56 = vstv %s555_s24  ;;  %s628_s12 = sld [smem:[#allocation3 + $0x28]]  ;;  %s634_s1 = sld [smem:[#allocation3 + $0x29]] }
  0x33   :  { %v104_v57 = vadd.f32 %v103_v51, %v101_v50  ;;  %v113_v58 = vmul.f32 %v112_v56, %v551_v21  ;;  %v116_v59 = vstv %s561_s25  ;;  %v119_v60 = vstv %s563_s26  ;;  %s636_s13 = sld [smem:[#allocation3 + $0x2a]]  ;;  %s641_s14 = sld [smem:[#allocation3 + $0x2b]] }
  0x34   :  { %v83_v61 = vadd.f32 %v82_v53, %v81_v49  ;;  %v105_v62 = vadd.f32 %v98_v54, %v91_v46  ;;  %v117_v63 = vmul.f32 %v116_v59, %v557_v25  ;;  %v120_v0 = vmul.f32 %v119_v60, %v565_v29  ;;  %s647_s15 = sld [smem:[#allocation3 + $0x2c]]  ;;  %s649_s16 = sld [smem:[#allocation3 + $0x41]] }
  0x35   :  { %v114_v1 = vadd.f32 %v113_v58, %v110_v55  ;;  %v123_v2 = vstv %s570_s27  ;;  %v126_v3 = vstv %s577_s0  ;;  %v132_v4 = vstv %s579_s28  ;;  %s653_s17 = sld [smem:[#allocation3 + $0x2d]]  ;;  %s655_s18 = sld [smem:[#allocation3 + $0x2e]] }
  0x36   :  { %v625_v5 = vmax.f32 %v83_v61, 0.0  ;;  %v106_v6 = vadd.f32 %v105_v62, %v104_v57  ;;  %v121_v7 = vadd.f32 %v120_v0, %v117_v63  ;;  %v124_v8 = vmul.f32 %v123_v2, %v572_v33  ;;  %s660_s19 = sld [smem:[#allocation3 + $0x2f]]  ;;  %s666_s20 = sld [smem:[#allocation3 + $0x30]] }
  0x37   :  { %v133_v9 = vmul.f32 %v132_v4, %v544_v17  ;;  %v135_v10 = vstv %s584_s29  ;;  %v139_v11 = vstv %s590_s30  ;;  %v142_v12 = vstv %s592_s3  ;;  %s668_s21 = sld [smem:[#allocation3 + $0x31]]  ;;  %s673_s22 = sld [smem:[#allocation3 + $0x42]] }
  0x38   :  { %v638_v13 = vmax.f32 %v106_v6, 0.0  ;;  %v127_v14 = vadd.f32 %v126_v3, %v124_v8  ;;  %v128_v15 = vadd.f32 %v121_v7, %v114_v1  ;;  %v136_v16 = vmul.f32 %v135_v10, %v551_v21  ;;  %s675_s23 = sld [smem:[#allocation3 + $0x32]]  ;;  %s680_s24 = sld [smem:[#allocation3 + $0x33]] }
  0x39   :  { %v140_v18 = vmul.f32 %v139_v11, %v557_v25  ;;  %v143_v19 = vmul.f32 %v142_v12, %v565_v29  ;;  %v146_v20 = vstv %s599_s4  ;;  %v149_v22 = vstv %s601_s5  ;;  %s682_s25 = sld [smem:[#allocation3 + $0x34]]  ;;  %s689_s26 = sld [smem:[#allocation3 + $0x35]] }
  0x3a   :  { %v129_v23 = vadd.f32 %v128_v15, %v127_v14  ;;  %v137_v24 = vadd.f32 %v136_v16, %v133_v9  ;;  %v147_v26 = vmul.f32 %v146_v20, %v572_v33  ;;  %v155_v27 = vstv %s605_s6  ;;  %s696_s27 = sld [smem:[#allocation3 + $0x36]]  ;;  %s700_s0 = sld [smem:[#allocation3 + $0x43]] }
  0x3b   :  { %v144_v28 = vadd.f32 %v143_v19, %v140_v18  ;;  %v156_v30 = vmul.f32 %v155_v27, %v544_v17  ;;  %v158_v31 = vstv %s610_s7  ;;  %v162_v32 = vstv %s612_s8  ;;  %s702_s28 = sld [smem:[#allocation3 + $0x37]]  ;;  %s708_s29 = sld [smem:[#allocation3 + $0x38]] }
  0x3c   :  { %v662_v34 = vmax.f32 %v129_v23, 0.0  ;;  %v150_v35 = vadd.f32 %v149_v22, %v147_v26  ;;  %v159_v36 = vmul.f32 %v158_v31, %v551_v21  ;;  %v163_v37 = vmul.f32 %v162_v32, %v557_v25  ;;  %s710_s30 = sld [smem:[#allocation3 + $0x39]]  ;;  %s717_s3 = sld [smem:[#allocation3 + $0x3a]] }
  0x3d   :  { %v151_v38 = vadd.f32 %v144_v28, %v137_v24  ;;  %v165_v17 = vstv %s616_s9  ;;  %v169_v39 = vstv %s621_s10  ;;  %v172_v40 = vstv %s623_s11  ;;  %s724_s4 = sld [smem:[#allocation3 + $0x3b]]  ;;  %s728_s5 = sld [smem:[#allocation3 + $0x44]] }
  0x3e   :  { %v160_v41 = vadd.f32 %v159_v36, %v156_v30  ;;  %v166_v21 = vmul.f32 %v165_v17, %v565_v29  ;;  %v170_v25 = vmul.f32 %v169_v39, %v572_v33  ;;  %v178_v42 = vstv %s628_s12  ;;  %s730_s6 = sld [smem:[#allocation3 + $0x3c]]  ;;  %s736_s7 = sld [smem:[#allocation3 + $0x3d]] }
  0x3f   :  { %v152_v43 = vadd.f32 %v151_v38, %v150_v35  ;;  %v179_v44 = vmul.f32 %v178_v42, %v625_v5  ;;  %v181_v45 = vstv %s634_s1  ;;  %v185_v46 = vstv %s636_s13  ;;  %s738_s8 = sld [smem:[#allocation3 + $0x3e]]  ;;  %s744_s9 = sld [smem:[#allocation3 + $0x3f]] }
  0x40   :  { %v167_v47 = vadd.f32 %v166_v21, %v163_v37  ;;  %v173_v48 = vadd.f32 %v172_v40, %v170_v25  ;;  %v182_v29 = vmul.f32 %v181_v45, %v638_v13  ;;  %v186_v49 = vmul.f32 %v185_v46, %v662_v34  ;;  %s746_s10 = sld [smem:[#allocation3 + $0x40]]  ;;  %s751_s11 = sld [smem:[#allocation3 + $0x45]] }
  0x41   :  { %v691_v33 = vmax.f32 %v152_v43, 0.0  ;;  %v188_v50 = vstv %s641_s14  ;;  %v192_v51 = vstv %s647_s15  ;;  %v195_v52 = vstv %s649_s16  ;;  %s753_s12 = sld [smem:[#allocation3 + $0x46]]  ;;  %s756_s1 = sld [smem:[#allocation3 + $0x47]] }
  0x42   :  { %v174_v53 = vadd.f32 %v167_v47, %v160_v41  ;;  %v183_v54 = vadd.f32 %v182_v29, %v179_v44  ;;  %v201_v55 = vstv %s653_s17  ;;  %v204_v56 = vstv %s655_s18  ;;  %s758_s13 = sld [smem:[#allocation3 + $0x48]]  ;;  %s765_s14 = sld [smem:[#allocation3 + $0x49]] }
  0x43   :  { %v189_v57 = vmul.f32 %v188_v50, %v691_v33  ;;  %v202_v58 = vmul.f32 %v201_v55, %v625_v5  ;;  %v205_v59 = vmul.f32 %v204_v56, %v638_v13  ;;  %v208_v60 = vstv %s660_s19  ;;  %s403_s15 = sld [smem:[#allocation3 + $0x4a]]  ;;  %s404_s16 = sld [smem:[#allocation3 + $0x4b]] }
  0x44   :  { %v175_v61 = vadd.f32 %v174_v53, %v173_v48  ;;  %v209_v62 = vmul.f32 %v208_v60, %v662_v34  ;;  %v211_v63 = vstv %s666_s20  ;;  %v215_v0 = vstv %s668_s21  ;;  %s470_s17 = smov [#allocation7]  }
  0x45   :  { %v190_v1 = vadd.f32 %v189_v57, %v186_v49  ;;  %v206_v2 = vadd.f32 %v205_v59, %v202_v58  ;;  %v212_v3 = vmul.f32 %v211_v63, %v691_v33  ;;  %v218_v4 = vstv %s673_s22  ;;  %s321_s18 = sshll.u32 %s470_s17, 4  ;;  %s322_s18 = int_to_ptr.vmem [resolvable:$true] %s321_s18 }
  0x46   :  { %v719_v6 = vmax.f32 %v175_v61, 0.0  ;;  %v224_v7 = vstv %s675_s23  ;;  %v227_v8 = vstv %s680_s24  ;;  %v231_v9 = vstv %s682_s25  ;;  %s440_s19 = scalar_lea.vmem %s322_s18, 128  ;;  %p445_p12 = scmp.lt.s32.totalorder %s322_s18, %s322_s18 }
  0x47   :  { %v197_v10 = vadd.f32 %v190_v1, %v183_v54  ;;  %v213_v11 = vadd.f32 %v212_v3, %v209_v62  ;;  %v225_v12 = vmul.f32 %v224_v7, %v625_v5  ;;  %v228_v14 = vmul.f32 %v227_v8, %v638_v13  ;;  %p441_p11 = scmp.ne.s32.totalorder %s322_s18, %s440_s19  ;;  %p446_p13 = scmp.lt.s32.totalorder %s440_s19, %s440_s19 }
  0x48   :  { %v193_v15 = vmul.f32 %v192_v51, %v719_v6  ;;  %v216_v16 = vmul.f32 %v215_v0, %v719_v6  ;;  %v232_v18 = vmul.f32 %v231_v9, %v662_v34  ;;  %v234_v19 = vstv %s689_s26 }
  0x49   :  { %v220_v20 = vadd.f32 %v213_v11, %v206_v2  ;;  %v229_v22 = vadd.f32 %v228_v14, %v225_v12  ;;  %v235_v23 = vmul.f32 %v234_v19, %v691_v33  ;;  %v238_v24 = vstv %s696_s27  ;;  %p447_p0 = por %p446_p13, %p445_p12 }
  0x4a   :  { %v196_v26 = vadd.f32 %v195_v52, %v193_v15  ;;  %v219_v27 = vadd.f32 %v218_v4, %v216_v16  ;;  %v239_v28 = vmul.f32 %v238_v24, %v719_v6  ;;  %v241_v30 = vstv %s700_s0 }
  0x4b   :  { %v236_v31 = vadd.f32 %v235_v23, %v232_v18  ;;  %v247_v32 = vstv %s702_s28  ;;  %v250_v35 = vstv %s708_s29  ;;  %v254_v36 = vstv %s710_s30  ;;  %p448_p1 = pnand %p447_p0, %p441_p11 }
  0x4c   :  { %v198_v37 = vadd.f32 %v197_v10, %v196_v26  ;;  %v221_v38 = vadd.f32 %v220_v20, %v219_v27  ;;  %v242_v17 = vadd.f32 %v241_v30, %v239_v28  ;;  %v248_v39 = vmul.f32 %v247_v32, %v625_v5 }
  0x4d   :  { %v243_v40 = vadd.f32 %v236_v31, %v229_v22  ;;  %v251_v41 = vmul.f32 %v250_v35, %v638_v13  ;;  %v255_v21 = vmul.f32 %v254_v36, %v662_v34  ;;  %v257_v25 = vstv %s717_s3 }
  0x4e   :  { %v199_v42 = vmax.f32 %v198_v37, 0.0  ;;  %v222_v43 = vmax.f32 %v221_v38, 0.0  ;;  %v258_v44 = vmul.f32 %v257_v25, %v691_v33  ;;  %v261_v45 = vstv %s724_s4 }
  0x4f   :  { %v244_v46 = vadd.f32 %v243_v40, %v242_v17  ;;  %v252_v47 = vadd.f32 %v251_v41, %v248_v39  ;;  %v262_v48 = vmul.f32 %v261_v45, %v719_v6  ;;  %v264_v29 = vstv %s728_s5 }
  0x50   :  { %v259_v49 = vadd.f32 %v258_v44, %v255_v21  ;;  %v270_v50 = vstv %s730_s6  ;;  %v273_v51 = vstv %s736_s7  ;;  %v277_v52 = vstv %s738_s8 }
  0x51   :  { %v245_v53 = vmax.f32 %v244_v46, 0.0  ;;  %v265_v54 = vadd.f32 %v264_v29, %v262_v48  ;;  %v271_v55 = vmul.f32 %v270_v50, %v625_v5  ;;  %v274_v56 = vmul.f32 %v273_v51, %v638_v13 }
  0x52   :  { %v266_v57 = vadd.f32 %v259_v49, %v252_v47  ;;  %v278_v58 = vmul.f32 %v277_v52, %v662_v34  ;;  %v280_v59 = vstv %s744_s9  ;;  %v284_v60 = vstv %s746_s10 }
  0x53   :  { %v275_v61 = vadd.f32 %v274_v56, %v271_v55  ;;  %v281_v62 = vmul.f32 %v280_v59, %v691_v33  ;;  %v285_v63 = vmul.f32 %v284_v60, %v719_v6  ;;  %v287_v0 = vstv %s751_s11 }
  0x54   :  { %v267_v1 = vadd.f32 %v266_v57, %v265_v54  ;;  %v293_v2 = vstv %s753_s12  ;;  %v296_v3 = vstv %s756_s1  ;;  %v300_v4 = vstv %s758_s13 }
  0x55   :  { %v282_v5 = vadd.f32 %v281_v62, %v278_v58  ;;  %v288_v13 = vadd.f32 %v287_v0, %v285_v63  ;;  %v294_v7 = vmul.f32 %v293_v2, %v199_v42  ;;  %v297_v8 = vmul.f32 %v296_v3, %v222_v43 }
  0x56   :  { %v268_v34 = vmax.f32 %v267_v1, 0.0  ;;  %v301_v9 = vmul.f32 %v300_v4, %v245_v53  ;;  %v303_v10 = vstv %s765_s14  ;;  %v307_v16 = vstv %s403_s15 }
  0x57   :  { %v289_v11 = vadd.f32 %v282_v5, %v275_v61  ;;  %v298_v15 = vadd.f32 %v297_v8, %v294_v7  ;;  %v310_v18 = vstv %s404_s16 }
  0x58   :  { %v304_v12 = vmul.f32 %v303_v10, %v268_v34 }
  0x59   :  { %v290_v14 = vadd.f32 %v289_v11, %v288_v13 }
  0x5a   :  { %v305_v33 = vadd.f32 %v304_v12, %v301_v9 }
  0x5b   :  { %v291_v6 = vmax.f32 %v290_v14, 0.0 }
  0x5c   :  { %v312_v20 = vadd.f32 %v305_v33, %v298_v15 }
  0x5d   :  { %v308_v19 = vmul.f32 %v307_v16, %v291_v6 }
  0x5f   :  { %v311_v22 = vadd.f32 %v310_v18, %v308_v19 }
  0x61   :  { %v313_v23 = vadd.f32 %v312_v20, %v311_v22 }
  0x63   :  { %314 = vst [vmem:[#allocation7] sm:$0xff] %v313_v23 }
  0x64   :  { %451 = shalt.err (!%p448_p1)
}
  0x65   :  { %s452_s22 = scalar_lea.hbm %s798_s2, 128 }
  0x66   :  { %p453_p2 = scmp.ne.s32.totalorder %s798_s2, %s452_s22  ;;  %p456_p3 = scmp.lt.u32.totalorder %s452_s22, %s798_s2 }
  0x68   :  { %p458_p4 = pnand %p456_p3, %p453_p2 }
  0x6a   :  { %461 = shalt.err (!%p458_p4)
}
  0x6b   :  { %324 = dma.vmem_to_hbm [thread:$0]  %s322_s18, 128, %s798_s2, [#allocation6]  }
  0x6c   :  { %466 = dma.done.wait [#allocation6], 128  }
  0x6d   :  { %467 = vsyncadd [#allocation6], 4294967168 }
  0x6e   :  { %328 = vsyncpa [#allocation5], 1 }
  0x6f   :  { %329 = vsyncpa [#allocation6], 1 }

</bundles_post_ra>
